<compile_context>
chip_gen: v7x
topology: tpu7x:2x2x1
jax: 0.10.0
libtpu: 0.0.40
codegen_flags: <defaults>
</compile_context>

<pallas_src>
import jax
import jax.numpy as jnp
from jax.experimental import pallas as pl
from jax.experimental.pallas import tpu as pltpu


IN_FEATURES = 784
HIDDEN = 260
NUM_CLASSES = 10
OUT_PAD = 128          # lane-dense padded logit width (multiple of 128)
NEG_INF = -1e30        # finite "-inf" for masking padded logit columns


def netfull_kernel(x_ref, w1_ref, b1_ref, w2_ref, b2_ref, out_ref):
    # x_ref:  (TB, 784) f32     w1_ref: (784, 260) bf16   b1_ref: (1, 260) f32
    # w2_ref: (260, 128) bf16   b2_ref: (1, 128)   f32    out_ref: (TB, 128) f32

    # Cast x to bf16 in-kernel (fused with the load) instead of a separate
    # wrapper-side XLA cast pass over HBM.
    x = x_ref[...].astype(jnp.bfloat16)

    # fc_hidden: bf16 MXU matmul with f32 accumulation; bias add in f32.
    hid_fc = (
        jnp.dot(x, w1_ref[...], preferred_element_type=jnp.float32) + b1_ref[...]
    )

    # tanh on bf16: second matmul needs bf16 inputs anyway; bf16 EUP is ~2x
    # faster on v6e/v7x (accuracy impact is well below the bf16 matmul noise).
    hidden = jnp.tanh(hid_fc.astype(jnp.bfloat16))

    # fc_output against the zero-padded (260, 128) weight: one clean 128-lane
    # MXU tile and lane-dense (unmasked) stores for the output.
    out_fc = (
        jnp.dot(hidden, w2_ref[...], preferred_element_type=jnp.float32)
        + b2_ref[...]
    )

    # Mask the padded logit columns (>= NUM_CLASSES) so the log_softmax max
    # and exp-sum only see the 10 real classes.
    col = jax.lax.broadcasted_iota(jnp.int32, out_fc.shape, 1)
    out_fc = jnp.where(col < NUM_CLASSES, out_fc, NEG_INF)

    # Numerically stable log_softmax along dim=1, all in f32.
    m = jnp.max(out_fc, axis=-1, keepdims=True)
    shifted = out_fc - m
    lse = jnp.log(jnp.sum(jnp.exp(shifted), axis=-1, keepdims=True))
    out_ref[...] = (shifted - lse).astype(out_ref.dtype)


def prepare_params(w1, b1, w2, b2):
    """One-time parameter prep (model-load time, NOT per forward call):
    pre-transpose + bf16-cast weights for the MXU; zero-pad the output layer
    to a lane-dense 128-wide tile; biases stay f32."""
    w1_t = w1.T.astype(jnp.bfloat16)                              # (784, 260)
    b1_2d = b1.reshape(1, -1).astype(jnp.float32)                 # (1, 260)
    w2_t = (
        jnp.zeros((HIDDEN, OUT_PAD), jnp.bfloat16)
        .at[:, :NUM_CLASSES]
        .set(w2.T.astype(jnp.bfloat16))
    )                                                             # (260, 128)
    b2_2d = (
        jnp.zeros((1, OUT_PAD), jnp.float32)
        .at[:, :NUM_CLASSES]
        .set(b2.reshape(1, -1).astype(jnp.float32))
    )                                                             # (1, 128)
    return w1_t, b1_2d, w2_t, b2_2d


def netfull_forward(x, w1_t, b1_2d, w2_t, b2_2d, *, tb=2048, core_parallel=False):
    """x: (B, 1, 28, 28) float32 (NCHW). Params from prepare_params().
    Returns (B, 10) float32 log-probabilities."""
    B = x.shape[0]
    x_flat = x.reshape(B, -1)        # (B, 784), stays f32; bf16 cast is in-kernel

    # Batch tiling: a big tile amortizes the ~0.35 us per-grid-step overhead
    # and per-step DMA setup. If the whole batch fits one tile use it directly
    # (block dim == full array dim satisfies the (8,128) rule, no padding).
    if B <= tb:
        TB = B
    else:
        TB = max(8, (tb // 8) * 8)
    n_tiles = pl.cdiv(B, TB)
    B_pad = n_tiles * TB
    if B_pad != B:
        # TODO(synk): handle the ragged tail tile with an in-kernel masked
        # store instead of materializing a padded copy of x.
        x_flat = jnp.pad(x_flat, ((0, B_pad - B), (0, 0)))

    # "parallel" is safe on every generation; pltpu.CORE_PARALLEL explicitly
    # shards the batch tiles across v7x's 2 TensorCores.
    batch_sem = pltpu.CORE_PARALLEL if core_parallel else "parallel"

    out = pl.pallas_call(
        netfull_kernel,
        out_shape=jax.ShapeDtypeStruct((B_pad, OUT_PAD), jnp.float32),
        grid_spec=pltpu.PrefetchScalarGridSpec(
            num_scalar_prefetch=0,
            grid=(n_tiles,),
            in_specs=[
                # x: streamed per batch tile (double-buffered, pipelined DMA).
                pl.BlockSpec((TB, IN_FEATURES), lambda i: (i, 0)),
                # weights/biases: constant block index -> resident across steps.
                pl.BlockSpec((IN_FEATURES, HIDDEN), lambda i: (0, 0)),
                pl.BlockSpec((1, HIDDEN), lambda i: (0, 0)),
                pl.BlockSpec((HIDDEN, OUT_PAD), lambda i: (0, 0)),
                pl.BlockSpec((1, OUT_PAD), lambda i: (0, 0)),
            ],
            out_specs=pl.BlockSpec((TB, OUT_PAD), lambda i: (i, 0)),
        ),
        compiler_params=pltpu.CompilerParams(
            dimension_semantics=(batch_sem,),
            # Explicit budget: TB=2048 f32 x (2 x 6.4 MiB) + f32 intermediates
            # + out tiles + weights ~ 25 MiB; 48 MiB leaves headroom and stays
            # under v7x's 64 MiB physical VMEM (v5e/v6e have 128 MiB).
            vmem_limit_bytes=48 * 1024 * 1024,
        ),
    )(x_flat, w1_t, b1_2d, w2_t, b2_2d)

    # Drop padded batch rows and padded logit columns.
    return out[:B, :NUM_CLASSES]


def reference_forward(x, w1, b1, w2, b2):
    """Pure-JAX f32 reference matching the PyTorch module exactly."""
    B = x.shape[0]
    xf = x.reshape(B, -1)
    hid = jnp.tanh(xf @ w1.T + b1)
    logits = hid @ w2.T + b2
    return jax.nn.log_softmax(logits, axis=1)


if __name__ == "__main__":
    key = jax.random.PRNGKey(0)
    k_x, k_w1, k_b1, k_w2, k_b2 = jax.random.split(key, 5)

    B = 4
    x = jax.random.normal(k_x, (B, 1, 28, 28), dtype=jnp.float32)

    # Deterministic synthetic parameters (PyTorch-Linear-like uniform init).
    bound1 = 1.0 / (784.0 ** 0.5)
    w1 = jax.random.uniform(k_w1, (260, 784), jnp.float32, -bound1, bound1)
    b1 = jax.random.uniform(k_b1, (260,), jnp.float32, -bound1, bound1)
    bound2 = 1.0 / (260.0 ** 0.5)
    w2 = jax.random.uniform(k_w2, (10, 260), jnp.float32, -bound2, bound2)
    b2 = jax.random.uniform(k_b2, (10,), jnp.float32, -bound2, bound2)

    # One-time weight prep (transposed, bf16, lane-dense padded output layer).
    params = prepare_params(w1, b1, w2, b2)

    out = netfull_forward(x, *params)
    out = jax.block_until_ready(out)

    ref = reference_forward(x, w1, b1, w2, b2)
    assert out.shape == (B, NUM_CLASSES)
    # bf16 matmul inputs + bf16 tanh with f32 accumulation -> loosened tolerance.
    assert jnp.allclose(out, ref, atol=3e-2, rtol=3e-2), (
        f"max abs err = {jnp.max(jnp.abs(out - ref))}"
    )

    print("KERNEL_OK")
</pallas_src>

<mosaic_0001>
module attributes {stable_mosaic.version = 11 : i64} {
  func.func @netfull_kernel(%arg0: i32, %arg1: memref<4x784xf32, #tpu.memory_space<vmem>>, %arg2: memref<784x260xbf16, #tpu.memory_space<vmem>>, %arg3: memref<1x260xf32, #tpu.memory_space<vmem>>, %arg4: memref<260x128xbf16, #tpu.memory_space<vmem>>, %arg5: memref<1x128xf32, #tpu.memory_space<vmem>>, %arg6: memref<4x128xf32, #tpu.memory_space<vmem>>) attributes {dimension_semantics = [#tpu.dimension_semantics<parallel>], iteration_bounds = array<i64: 1>, scalar_prefetch = 0 : i64, scratch_operands = 0 : i64, tpu.core_type = #tpu.core_type<tc>, window_params = [{transform_indices = @transform_0, window_bounds = array<i64: 4, 784>}, {pipeline_mode = #tpu.pipeline_mode<synchronous>, transform_indices = @transform_1, window_bounds = array<i64: 784, 260>}, {pipeline_mode = #tpu.pipeline_mode<synchronous>, transform_indices = @transform_2, window_bounds = array<i64: 1, 260>}, {pipeline_mode = #tpu.pipeline_mode<synchronous>, transform_indices = @transform_3, window_bounds = array<i64: 260, 128>}, {pipeline_mode = #tpu.pipeline_mode<synchronous>, transform_indices = @transform_4, window_bounds = array<i64: 1, 128>}, {transform_indices = @transform_5, window_bounds = array<i64: 4, 128>}]} {
    %c0 = arith.constant 0 : index
    %c0_0 = arith.constant 0 : index
    %0 = vector.load %arg1[%c0, %c0_0] : memref<4x784xf32, #tpu.memory_space<vmem>>, vector<4x784xf32>
    %1 = arith.truncf %0 : vector<4x784xf32> to vector<4x784xbf16>
    %c0_1 = arith.constant 0 : index
    %c0_2 = arith.constant 0 : index
    %2 = vector.load %arg2[%c0_1, %c0_2] : memref<784x260xbf16, #tpu.memory_space<vmem>>, vector<784x260xbf16>
    %cst = arith.constant dense<0.000000e+00> : vector<4x260xf32>
    %3 = tpu.matmul %1, %2, %cst {dimension_numbers = #tpu.dot_dimension_numbers<[1], [0], [0], [1], [0, 0, 1, 1], [], []>} : vector<4x784xbf16>, vector<784x260xbf16>, vector<4x260xf32> -> vector<4x260xf32>
    %c0_3 = arith.constant 0 : index
    %c0_4 = arith.constant 0 : index
    %4 = vector.load %arg3[%c0_3, %c0_4] : memref<1x260xf32, #tpu.memory_space<vmem>>, vector<1x260xf32>
    %5 = vector.broadcast %4 : vector<1x260xf32> to vector<4x260xf32>
    %6 = arith.addf %3, %5 : vector<4x260xf32>
    %7 = arith.truncf %6 : vector<4x260xf32> to vector<4x260xbf16>
    %8 = math.tanh %7 : vector<4x260xbf16>
    %c0_5 = arith.constant 0 : index
    %c0_6 = arith.constant 0 : index
    %9 = vector.load %arg4[%c0_5, %c0_6] : memref<260x128xbf16, #tpu.memory_space<vmem>>, vector<260x128xbf16>
    %cst_7 = arith.constant dense<0.000000e+00> : vector<4x128xf32>
    %10 = tpu.matmul %8, %9, %cst_7 {dimension_numbers = #tpu.dot_dimension_numbers<[1], [0], [0], [1], [0, 0, 1, 1], [], []>} : vector<4x260xbf16>, vector<260x128xbf16>, vector<4x128xf32> -> vector<4x128xf32>
    %c0_8 = arith.constant 0 : index
    %c0_9 = arith.constant 0 : index
    %11 = vector.load %arg5[%c0_8, %c0_9] : memref<1x128xf32, #tpu.memory_space<vmem>>, vector<1x128xf32>
    %12 = vector.broadcast %11 : vector<1x128xf32> to vector<4x128xf32>
    %13 = arith.addf %10, %12 : vector<4x128xf32>
    %14 = tpu.iota {dimensions = array<i32: 1>} : vector<4x128xi32>
    %c10_i32 = arith.constant 10 : i32
    %15 = vector.broadcast %c10_i32 : i32 to vector<4x128xi32>
    %16 = arith.cmpi slt, %14, %15 : vector<4x128xi32>
    %cst_10 = arith.constant -1.000000e+30 : f32
    %17 = vector.broadcast %cst_10 : f32 to vector<4x128xf32>
    %18 = arith.select %16, %13, %17 : vector<4x128xi1>, vector<4x128xf32>
    %cst_11 = arith.constant dense<0xFF800000> : vector<4xf32>
    %19 = vector.multi_reduction <maximumf>, %18, %cst_11 [1] : vector<4x128xf32> to vector<4xf32>
    %20 = vector.shape_cast %19 : vector<4xf32> to vector<4x1xf32>
    %21 = vector.broadcast %20 : vector<4x1xf32> to vector<4x128xf32>
    %22 = arith.subf %18, %21 : vector<4x128xf32>
    %23 = math.exp %22 : vector<4x128xf32>
    %cst_12 = arith.constant dense<0.000000e+00> : vector<4xf32>
    %24 = vector.multi_reduction <add>, %23, %cst_12 [1] : vector<4x128xf32> to vector<4xf32>
    %25 = vector.shape_cast %24 : vector<4xf32> to vector<4x1xf32>
    %26 = math.log %25 : vector<4x1xf32>
    %27 = vector.broadcast %26 : vector<4x1xf32> to vector<4x128xf32>
    %28 = arith.subf %22, %27 : vector<4x128xf32>
    %c0_13 = arith.constant 0 : index
    %c0_14 = arith.constant 0 : index
    %29 = vector.load %arg6[%c0_13, %c0_14] : memref<4x128xf32, #tpu.memory_space<vmem>>, vector<4x128xf32>
    tpu.vector_store %arg6[%c0_13, %c0_14], %28 {strides = array<i32>} : memref<4x128xf32, #tpu.memory_space<vmem>>, vector<4x128xf32>,
    return
  }
  func.func @transform_0(%arg0: i32) -> (i32, i32) {
    %c0_i32 = arith.constant 0 : i32
    %c0_i32_0 = arith.constant 0 : i32
    return %arg0, %c0_i32 : i32, i32
  }
  func.func @transform_1(%arg0: i32) -> (i32, i32) {
    %c0_i32 = arith.constant 0 : i32
    %c0_i32_0 = arith.constant 0 : i32
    %c0_i32_1 = arith.constant 0 : i32
    return %c0_i32, %c0_i32_0 : i32, i32
  }
  func.func @transform_2(%arg0: i32) -> (i32, i32) {
    %c0_i32 = arith.constant 0 : i32
    %c0_i32_0 = arith.constant 0 : i32
    %c0_i32_1 = arith.constant 0 : i32
    return %c0_i32, %c0_i32_0 : i32, i32
  }
  func.func @transform_3(%arg0: i32) -> (i32, i32) {
    %c0_i32 = arith.constant 0 : i32
    %c0_i32_0 = arith.constant 0 : i32
    %c0_i32_1 = arith.constant 0 : i32
    return %c0_i32, %c0_i32_0 : i32, i32
  }
  func.func @transform_4(%arg0: i32) -> (i32, i32) {
    %c0_i32 = arith.constant 0 : i32
    %c0_i32_0 = arith.constant 0 : i32
    %c0_i32_1 = arith.constant 0 : i32
    return %c0_i32, %c0_i32_0 : i32, i32
  }
  func.func @transform_5(%arg0: i32) -> (i32, i32) {
    %c0_i32 = arith.constant 0 : i32
    %c0_i32_0 = arith.constant 0 : i32
    return %arg0, %c0_i32 : i32, i32
  }
}

</mosaic_0001>

<bundles_post_ra>
// kernel: tpu_custom_call.1
= control target key start
LH: loop header
LB: loop body
LE: loop exit
PB: predicated region body
PF: predicated region fallthrough
CT: control target
= control target key end

     0   :  { %v2170_v2 = vmov 0   ;;  %vm1039_vm0 = vcmask 130048   ;;  %vm2172_vm1 = vmmov 0   ;;  %s2751_s0 = inlined_call_operand.vmem [shape: f32[4,784], index: 0, kind: input, shape index: {}]   ;;  %s2752_s1 = inlined_call_operand.vmem [shape: bf16[784,260], index: 1, kind: input, shape index: {}]   ;;  %s2753_s2 = inlined_call_operand.vmem [shape: f32[1,260], index: 2, kind: input, shape index: {}]   ;;  %s2754_s3 = inlined_call_operand.vmem [shape: bf16[260,128], index: 3, kind: input, shape index: {}]   ;;  %s2755_s4 = inlined_call_operand.vmem [shape: f32[1,128], index: 4, kind: input, shape index: {}]   ;;  %s2756_s5 = inlined_call_operand.hbm [shape: f32[4,128], index: 5, kind: output, shape index: {}]  }
   0x1   :  { %v1920_v0 = vld [vmem:[%s2752_s1 + $0x4] ss:$12 sps:$4 sm:$0xff]   ;;  %v1922_v1 = vld [vmem:[%s2752_s1] ss:$12 sps:$4 sm:$0xff]   ;;  %1198 = vmatprep.mubr.bf16.mxu1 %v2170_v2  ;;  %v1923_v3 = vld [vmem:[%s2752_s1 + $0x1c] ss:$12 sps:$4 sm:$0xff]  }
   0x2   :  { %1043 = vmatprep.subr.bf16.mxu0 %v1920_v0  ;;  %v1925_v4 = vld [vmem:[%s2752_s1 + $0x18] ss:$12 sps:$4 sm:$0xff]   ;;  %v1926_v5 = vld [vmem:[%s2752_s1 + $0x34] ss:$12 sps:$4 sm:$0xff]   ;;  %v1928_v6 = vld [vmem:[%s2752_s1 + $0x30] ss:$12 sps:$4 sm:$0xff]  }
   0x3   :  { %1044 = vmatpush1.bf16.msra.mxu0 %v1922_v1  ;;  %v1929_v7 = vld [vmem:[%s2752_s1 + $0x4c] ss:$12 sps:$4 sm:$0xff]   ;;  %v1931_v8 = vld [vmem:[%s2752_s1 + $0x48] ss:$12 sps:$4 sm:$0xff]   ;;  %v1932_v9 = vld [vmem:[%s2752_s1 + $0x64] ss:$12 sps:$4 sm:$0xff]  }
   0x4   :  { %1045 = vmatprep.subr.bf16.mxu0 %v1923_v3  ;;  %v1946_v10 = vld [vmem:[%s2752_s1 + $0x484] ss:$12 sps:$4 sm:$0xff]   ;;  %v1949_v11 = vld [vmem:[%s2752_s1 + $0x480] ss:$12 sps:$4 sm:$0xff]   ;;  %v1935_v13 = vld [vmem:[%s2752_s1 + $0x7c] ss:$12 sps:$4 sm:$0xff]  }
   0x5   :  { %v1934_v12 = vld [vmem:[%s2752_s1 + $0x60] ss:$12 sps:$4 sm:$0xff]   ;;  %1166 = vmatprep.subr.bf16.mxu1 %v1946_v10  ;;  %v1952_v14 = vld [vmem:[%s2752_s1 + $0xc8] ss:$12 sps:$4 sm:$0xff]   ;;  %v25_v15 = vld [vmem:[%s2751_s0 + $0x18] sm:$0xf] }
   0x6   :  { %1167 = vmatpush1.bf16.msra.mxu1 %v1949_v11  ;;  %v2249_v16 = vpack.c.bf16 %v25_v15, %v25_v15  ;;  %v1954_v17 = vld [vmem:[%s2752_s1 + $0x8] ss:$12 sps:$4 sm:$0xff]   ;;  %v1937_v18 = vld [vmem:[%s2752_s1 + $0x78] ss:$12 sps:$4 sm:$0xff]   ;;  %v1957_v19 = vld [vmem:[%s2752_s1 + $0xe0] ss:$12 sps:$4 sm:$0xff]  }
   0x7   :  { %1046 = vmatpush1.bf16.msra.mxu0 %v1925_v4  ;;  %1800 = vmatprep.subr.bf16.mxu1 %v1952_v14  ;;  %v1938_v20 = vld [vmem:[%s2752_s1 + $0x94] ss:$12 sps:$4 sm:$0xff]   ;;  %v1940_v22 = vld [vmem:[%s2752_s1 + $0x90] ss:$12 sps:$4 sm:$0xff]   ;;  %v1962_v23 = vld [vmem:[%s2752_s1 + $0xf8] ss:$12 sps:$4 sm:$0xff]  }
   0x8   :  { %1047 = vmatprep.subr.bf16.mxu0 %v1926_v5  ;;  %v1959_v21 = vld [vmem:[%s2752_s1 + $0x20] ss:$12 sps:$4 sm:$0xff]   ;;  %v1964_v24 = vld [vmem:[%s2752_s1 + $0x38] ss:$12 sps:$4 sm:$0xff]   ;;  %v1943_v26 = vld [vmem:[%s2752_s1 + $0xa8] ss:$12 sps:$4 sm:$0xff]  }
   0x9   :  { %1779 = vmatmul.mubr.msk.bf16.vlgmr.msra.gmra.mrb[0].mxu1 %vm1039_vm0, %v2249_v16  ;;  %v1941_v25 = vld [vmem:[%s2752_s1 + $0xac] ss:$12 sps:$4 sm:$0xff]   ;;  %v1967_v27 = vld [vmem:[%s2752_s1 + $0x110] ss:$12 sps:$4 sm:$0xff]   ;;  %v1972_v30 = vld [vmem:[%s2752_s1 + $0x128] ss:$12 sps:$4 sm:$0xff]  }
   0xa   :  { %1801 = vmatpush3.bf16.msra.mxu1 %v1954_v17  ;;  %v1944_v28 = vld [vmem:[%s2752_s1 + $0xc4] ss:$12 sps:$4 sm:$0xff]   ;;  %v1948_v31 = vld [vmem:[%s2752_s1 + $0xc0] ss:$12 sps:$4 sm:$0xff]   ;;  %v1974_v32 = vld [vmem:[%s2752_s1 + $0x68] ss:$12 sps:$4 sm:$0xff]  }
   0xb   :  { %1048 = vmatpush1.bf16.msra.mxu0 %v1928_v6  ;;  %1802 = vmatprep.subr.bf16.mxu1 %v1957_v19  ;;  %v1969_v29 = vld [vmem:[%s2752_s1 + $0x50] ss:$12 sps:$4 sm:$0xff]   ;;  %v1977_v34 = vld [vmem:[%s2752_s1 + $0x140] ss:$12 sps:$4 sm:$0xff]   ;;  %v1953_v35 = vld [vmem:[%s2752_s1 + $0xd8] ss:$12 sps:$4 sm:$0xff]  }
   0xc   :  { %1049 = vmatprep.subr.bf16.mxu0 %v1929_v7  ;;  %v1950_v33 = vld [vmem:[%s2752_s1 + $0xdc] ss:$12 sps:$4 sm:$0xff]   ;;  %v1955_v36 = vld [vmem:[%s2752_s1 + $0xf4] ss:$12 sps:$4 sm:$0xff]   ;;  %v1982_v38 = vld [vmem:[%s2752_s1 + $0x158] ss:$12 sps:$4 sm:$0xff]  }
   0xd   :  { %v1979_v37 = vld [vmem:[%s2752_s1 + $0x80] ss:$12 sps:$4 sm:$0xff]   ;;  %v1958_v40 = vld [vmem:[%s2752_s1 + $0xf0] ss:$12 sps:$4 sm:$0xff]   ;;  %v1984_v43 = vld [vmem:[%s2752_s1 + $0x98] ss:$12 sps:$4 sm:$0xff]  }
   0xe   :  { %1803 = vmatpush3.bf16.msra.mxu1 %v1959_v21  ;;  %v22_v39 = vld [vmem:[%s2751_s0] sm:$0xff]  ;;  %v1960_v41 = vld [vmem:[%s2752_s1 + $0x10c] ss:$12 sps:$4 sm:$0xff]   ;;  %v1989_v45 = vld [vmem:[%s2752_s1 + $0x170] ss:$12 sps:$4 sm:$0xff]  }
   0xf   :  { %1050 = vmatpush1.bf16.msra.mxu0 %v1931_v8  ;;  %1804 = vmatprep.subr.bf16.mxu1 %v1962_v23  ;;  %v29_v42 = vcombine.high %v22_v39, %v22_v39  ;;  %v1963_v46 = vld [vmem:[%s2752_s1 + $0x108] ss:$12 sps:$4 sm:$0xff]   ;;  %v1965_v47 = vld [vmem:[%s2752_s1 + $0x124] ss:$12 sps:$4 sm:$0xff]   ;;  %v1968_v50 = vld [vmem:[%s2752_s1 + $0x120] ss:$12 sps:$4 sm:$0xff]   ;;  %v35_v53 = vpack.c.bf16 %v22_v39, %v22_v39 }
  0x10   :  { %1051 = vmatprep.subr.bf16.mxu0 %v1932_v9  ;;  %v1990_v48 = vld [vmem:[%s2752_s1 + $0xb0] ss:$12 sps:$4 sm:$0xff]   ;;  %v1994_v49 = vld [vmem:[%s2752_s1 + $0x248] ss:$12 sps:$4 sm:$0xff]   ;;  %v1999_v54 = vld [vmem:[%s2752_s1 + $0x260] ss:$12 sps:$4 sm:$0xff]  }
  0x11   :  { %v36_v44 = vpack.c.bf16 %v29_v42, %v29_v42  ;;  %v1995_v51 = vld [vmem:[%s2752_s1 + $0x188] ss:$12 sps:$4 sm:$0xff]   ;;  %v1973_v55 = vld [vmem:[%s2752_s1 + $0x138] ss:$12 sps:$4 sm:$0xff]   ;;  %v2000_v57 = vld [vmem:[%s2752_s1 + $0x1a0] ss:$12 sps:$4 sm:$0xff]  }
  0x12   :  { %1805 = vmatpush3.bf16.msra.mxu1 %v1964_v24  ;;  %v1970_v52 = vld [vmem:[%s2752_s1 + $0x13c] ss:$12 sps:$4 sm:$0xff]   ;;  %v1975_v56 = vld [vmem:[%s2752_s1 + $0x154] ss:$12 sps:$4 sm:$0xff]   ;;  %v2004_v58 = vld [vmem:[%s2752_s1 + $0x278] ss:$12 sps:$4 sm:$0xff]  }
  0x13   :  { %1052 = vmatpush1.bf16.msra.mxu0 %v1934_v12  ;;  %1806 = vmatprep.subr.bf16.mxu1 %v1967_v27  ;;  %v1978_v59 = vld [vmem:[%s2752_s1 + $0x150] ss:$12 sps:$4 sm:$0xff]   ;;  %v1980_v60 = vld [vmem:[%s2752_s1 + $0x16c] ss:$12 sps:$4 sm:$0xff]   ;;  %v1983_v63 = vld [vmem:[%s2752_s1 + $0x168] ss:$12 sps:$4 sm:$0xff]  }
  0x14   :  { %1053 = vmatprep.subr.bf16.mxu0 %v1935_v13  ;;  %1075 = vmatprep.mubr.bf16.mxu0 %v36_v44  ;;  %v2005_v61 = vld [vmem:[%s2752_s1 + $0x1b8] ss:$12 sps:$4 sm:$0xff]   ;;  %v2009_v62 = vld [vmem:[%s2752_s1 + $0x290] ss:$12 sps:$4 sm:$0xff]   ;;  %v2014_v2 = vld [vmem:[%s2752_s1 + $0x2a8] ss:$12 sps:$4 sm:$0xff]  }
  0x15   :  { %1239 = vmatprep.mubr.bf16.mxu1 %v36_v44  ;;  %v1988_v0 = vld [vmem:[%s2752_s1 + $0x184] ss:$12 sps:$4 sm:$0xff]   ;;  %v1986_v3 = vld [vmem:[%s2752_s1 + $0x180] ss:$12 sps:$4 sm:$0xff]   ;;  %v1993_v4 = vld [vmem:[%s2752_s1 + $0x19c] ss:$12 sps:$4 sm:$0xff]  }
  0x16   :  { %1807 = vmatpush3.bf16.msra.mxu1 %v1969_v29  ;;  %v2010_v1 = vld [vmem:[%s2752_s1 + $0x1d0] ss:$12 sps:$4 sm:$0xff]   ;;  %v2015_v5 = vld [vmem:[%s2752_s1 + $0x1e8] ss:$12 sps:$4 sm:$0xff]   ;;  %v2019_v6 = vld [vmem:[%s2752_s1 + $0x2c0] ss:$12 sps:$4 sm:$0xff]  }
  0x17   :  { %1054 = vmatpush1.bf16.msra.mxu0 %v1937_v18  ;;  %1808 = vmatprep.subr.bf16.mxu1 %v1972_v30  ;;  %v1991_v7 = vld [vmem:[%s2752_s1 + $0x198] ss:$12 sps:$4 sm:$0xff]   ;;  %v2020_v8 = vld [vmem:[%s2752_s1 + $0x200] ss:$12 sps:$4 sm:$0xff]   ;;  %v1996_v12 = vld [vmem:[%s2752_s1 + $0x1b0] ss:$12 sps:$4 sm:$0xff]  }
  0x18   :  { %1055 = vmatprep.subr.bf16.mxu0 %v1938_v20  ;;  %v1998_v9 = vld [vmem:[%s2752_s1 + $0x1b4] ss:$12 sps:$4 sm:$0xff]   ;;  %v2024_v10 = vld [vmem:[%s2752_s1 + $0x2d8] ss:$12 sps:$4 sm:$0xff]   ;;  %v23_v11 = vld [vmem:[%s2751_s0 + $0x8] sm:$0xff] }
  0x19   :  { %v30_v13 = vcombine.high %v23_v11, %v23_v11  ;;  %v2003_v14 = vld [vmem:[%s2752_s1 + $0x1cc] ss:$12 sps:$4 sm:$0xff]   ;;  %v2029_v18 = vld [vmem:[%s2752_s1 + $0x2f0] ss:$12 sps:$4 sm:$0xff]   ;;  %v2001_v19 = vld [vmem:[%s2752_s1 + $0x1c8] ss:$12 sps:$4 sm:$0xff]  }
  0x1a   :  { %1809 = vmatpush3.bf16.msra.mxu1 %v1974_v32  ;;  %v2025_v15 = vld [vmem:[%s2752_s1 + $0x218] ss:$12 sps:$4 sm:$0xff]   ;;  %v2030_v21 = vld [vmem:[%s2752_s1 + $0x230] ss:$12 sps:$4 sm:$0xff]   ;;  %v2006_v23 = vld [vmem:[%s2752_s1 + $0x1e0] ss:$12 sps:$4 sm:$0xff]  }
  0x1b   :  { %1056 = vmatpush1.bf16.msra.mxu0 %v1940_v22  ;;  %1810 = vmatprep.subr.bf16.mxu1 %v1977_v34  ;;  %v38_v17 = vpack.c.bf16 %v30_v13, %v30_v13  ;;  %v2008_v20 = vld [vmem:[%s2752_s1 + $0x1e4] ss:$12 sps:$4 sm:$0xff]   ;;  %v2035_v22 = vld [vmem:[%s2752_s1 + $0x3c8] ss:$12 sps:$4 sm:$0xff]   ;;  %v2040_v27 = vld [vmem:[%s2752_s1 + $0x3e0] ss:$12 sps:$4 sm:$0xff]  }
  0x1c   :  { %1057 = vmatprep.subr.bf16.mxu0 %v1941_v25  ;;  %v2013_v24 = vld [vmem:[%s2752_s1 + $0x1fc] ss:$12 sps:$4 sm:$0xff]   ;;  %v2451_v25 = vpack.c.bf16 %v23_v11, %v23_v11  ;;  %v2018_v29 = vld [vmem:[%s2752_s1 + $0x214] ss:$12 sps:$4 sm:$0xff]   ;;  %v2023_v34 = vld [vmem:[%s2752_s1 + $0x22c] ss:$12 sps:$4 sm:$0xff]  }
  0x1d   :  { %v2041_v30 = vld [vmem:[%s2752_s1 + $0x320] ss:$12 sps:$4 sm:$0xff]   ;;  %v2016_v32 = vld [vmem:[%s2752_s1 + $0x210] ss:$12 sps:$4 sm:$0xff]   ;;  %v2055_v39 = vld [vmem:[%s2752_s1 + $0x428] ss:$12 sps:$4 sm:$0xff]  }
  0x1e   :  { %1811 = vmatpush3.bf16.msra.mxu1 %v1979_v37  ;;  %v2028_v37 = vld [vmem:[%s2752_s1 + $0x244] ss:$12 sps:$4 sm:$0xff]   ;;  %v2033_v42 = vld [vmem:[%s2752_s1 + $0x25c] ss:$12 sps:$4 sm:$0xff]  }
  0x1f   :  { %1058 = vmatpush1.bf16.msra.mxu0 %v1943_v26  ;;  %1812 = vmatprep.subr.bf16.mxu1 %v1982_v38  ;;  %v2036_v26 = vld [vmem:[%s2752_s1 + $0x308] ss:$12 sps:$4 sm:$0xff]   ;;  %v2051_v38 = vld [vmem:[%s2752_s1 + $0x350] ss:$12 sps:$4 sm:$0xff]  }
  0x20   :  { %1059 = vmatprep.subr.bf16.mxu0 %v1944_v28  ;;  %v2011_v28 = vld [vmem:[%s2752_s1 + $0x1f8] ss:$12 sps:$4 sm:$0xff]  }
  0x22   :  { %1813 = vmatpush3.bf16.msra.mxu1 %v1984_v43  ;;  %v2056_v43 = vld [vmem:[%s2752_s1 + $0x368] ss:$12 sps:$4 sm:$0xff]  }
  0x23   :  { %1060 = vmatpush1.bf16.msra.mxu0 %v1948_v31  ;;  %1814 = vmatprep.subr.bf16.mxu1 %v1989_v45  ;;  %v2045_v31 = vld [vmem:[%s2752_s1 + $0x3f8] ss:$12 sps:$4 sm:$0xff]   ;;  %v2060_v45 = vld [vmem:[%s2752_s1 + $0x440] ss:$12 sps:$4 sm:$0xff]  }
  0x24   :  { %1061 = vmatprep.subr.bf16.mxu0 %v1950_v33  ;;  %v2046_v33 = vld [vmem:[%s2752_s1 + $0x338] ss:$12 sps:$4 sm:$0xff]  }
  0x26   :  { %1815 = vmatpush3.bf16.msra.mxu1 %v1990_v48  ;;  %v2061_v48 = vld [vmem:[%s2752_s1 + $0x380] ss:$12 sps:$4 sm:$0xff]  }
  0x27   :  { %1062 = vmatpush1.bf16.msra.mxu0 %v1953_v35  ;;  %1822 = vmatprep.subr.bf16.mxu1 %v1994_v49  ;;  %v2050_v35 = vld [vmem:[%s2752_s1 + $0x410] ss:$12 sps:$4 sm:$0xff]   ;;  %v2039_v49 = vld [vmem:[%s2752_s1 + $0x274] ss:$12 sps:$4 sm:$0xff]  }
  0x28   :  { %1063 = vmatprep.subr.bf16.mxu0 %v1955_v36  ;;  %v2021_v36 = vld [vmem:[%s2752_s1 + $0x228] ss:$12 sps:$4 sm:$0xff]  }
  0x29   :  { %1240 = vmatmul.mubr.bf16.vlgmr.msra.gmra.mrb[4].mxu1 %v35_v53 }
  0x2a   :  { %1823 = vmatpush3.bf16.msra.mxu1 %v1995_v51  ;;  %1279 = vmatprep.mubr.bf16.mxu1 %v38_v17  ;;  %v2037_v51 = vld [vmem:[%s2752_s1 + $0x270] ss:$12 sps:$4 sm:$0xff]  }
  0x2b   :  { %1064 = vmatpush1.bf16.msra.mxu0 %v1958_v40  ;;  %1824 = vmatprep.subr.bf16.mxu1 %v1999_v54  ;;  %v2026_v40 = vld [vmem:[%s2752_s1 + $0x240] ss:$12 sps:$4 sm:$0xff]   ;;  %v2070_v54 = vld [vmem:[%s2752_s1 + $0x470] ss:$12 sps:$4 sm:$0xff]  }
  0x2c   :  { %1065 = vmatprep.subr.bf16.mxu0 %v1960_v41  ;;  %v24_v41 = vld [vmem:[%s2751_s0 + $0x10] sm:$0xff] }
  0x2d   :  { %v31_v44 = vcombine.high %v24_v41, %v24_v41 }
  0x2e   :  { %1825 = vmatpush3.bf16.msra.mxu1 %v2000_v57  ;;  %v2049_v57 = vld [vmem:[%s2752_s1 + $0x2a4] ss:$12 sps:$4 sm:$0xff]  }
  0x2f   :  { %1066 = vmatpush1.bf16.msra.mxu0 %v1963_v46  ;;  %1826 = vmatprep.subr.bf16.mxu1 %v2004_v58  ;;  %v40_v46 = vpack.c.bf16 %v31_v44, %v31_v44  ;;  %v2544_v58 = vpack.c.bf16 %v24_v41, %v24_v41 }
  0x30   :  { %1067 = vmatprep.subr.bf16.mxu0 %v1965_v47  ;;  %v2031_v47 = vld [vmem:[%s2752_s1 + $0x258] ss:$12 sps:$4 sm:$0xff]  }
  0x32   :  { %1827 = vmatpush3.bf16.msra.mxu1 %v2005_v61  ;;  %v2054_v61 = vld [vmem:[%s2752_s1 + $0x2bc] ss:$12 sps:$4 sm:$0xff]  }
  0x33   :  { %1068 = vmatpush1.bf16.msra.mxu0 %v1968_v50  ;;  %1828 = vmatprep.subr.bf16.mxu1 %v2009_v62  ;;  %v2065_v50 = vld [vmem:[%s2752_s1 + $0x458] ss:$12 sps:$4 sm:$0xff]   ;;  %v2171_v62 = vmov 0.0  }
  0x34   :  { %1069 = vmatprep.subr.bf16.mxu0 %v1970_v52  ;;  %v2066_v52 = vld [vmem:[%s2752_s1 + $0x398] ss:$12 sps:$4 sm:$0xff]  }
  0x36   :  { %1829 = vmatpush3.bf16.msra.mxu1 %v2010_v1  ;;  %v2057_v1 = vld [vmem:[%s2752_s1 + $0x2d0] ss:$12 sps:$4 sm:$0xff]  }
  0x37   :  { %1070 = vmatpush1.bf16.msra.mxu0 %v1973_v55  ;;  %1830 = vmatprep.subr.bf16.mxu1 %v2014_v2  ;;  %v2042_v55 = vld [vmem:[%s2752_s1 + $0x288] ss:$12 sps:$4 sm:$0xff]   ;;  %v2064_v2 = vld [vmem:[%s2752_s1 + $0x2ec] ss:$12 sps:$4 sm:$0xff]  }
  0x38   :  { %1071 = vmatprep.subr.bf16.mxu0 %v1975_v56  ;;  %v2071_v56 = vld [vmem:[%s2752_s1 + $0x3b0] ss:$12 sps:$4 sm:$0xff]  }
  0x3a   :  { %1831 = vmatpush3.bf16.msra.mxu1 %v2015_v5 }
  0x3b   :  { %1072 = vmatpush1.bf16.msra.mxu0 %v1978_v59  ;;  %1832 = vmatprep.subr.bf16.mxu1 %v2019_v6  ;;  %v2047_v59 = vld [vmem:[%s2752_s1 + $0x2a0] ss:$12 sps:$4 sm:$0xff]  }
  0x3c   :  { %1073 = vmatprep.subr.bf16.mxu0 %v1980_v60  ;;  %v2079_v60 = vld [vmem:[%s2752_s1 + $0x488] ss:$12 sps:$4 sm:$0xff]  }
  0x3e   :  { %1833 = vmatpush3.bf16.msra.mxu1 %v2020_v8 }
  0x3f   :  { %1074 = vmatpush1.bf16.msra.mxu0 %v1983_v63  ;;  %1834 = vmatprep.subr.bf16.mxu1 %v2024_v10  ;;  %v2052_v63 = vld [vmem:[%s2752_s1 + $0x2b8] ss:$12 sps:$4 sm:$0xff]  }
  0x40   :  { %1084 = vmatprep.subr.bf16.mxu0 %v1988_v0  ;;  %v2059_v0 = vld [vmem:[%s2752_s1 + $0x2d4] ss:$12 sps:$4 sm:$0xff]  }
  0x42   :  { %1076 = vmatmul.mubr.bf16.vlgmr.msra.gmra.mrb[0].mxu0 %v35_v53  ;;  %1835 = vmatpush3.bf16.msra.mxu1 %v2025_v15  ;;  %v2044_v53 = vld [vmem:[%s2752_s1 + $0x28c] ss:$12 sps:$4 sm:$0xff]  }
  0x43   :  { %1085 = vmatpush1.bf16.msra.mxu0 %v1986_v3  ;;  %1116 = vmatprep.mubr.bf16.mxu0 %v38_v17  ;;  %v2062_v3 = vld [vmem:[%s2752_s1 + $0x2e8] ss:$12 sps:$4 sm:$0xff]  }
  0x44   :  { %1086 = vmatprep.subr.bf16.mxu0 %v1993_v4  ;;  %1836 = vmatprep.subr.bf16.mxu1 %v2029_v18  ;;  %v2069_v4 = vld [vmem:[%s2752_s1 + $0x304] ss:$12 sps:$4 sm:$0xff]  }
  0x46   :  { %1837 = vmatpush3.bf16.msra.mxu1 %v2030_v21 }
  0x47   :  { %1087 = vmatpush1.bf16.msra.mxu0 %v1991_v7  ;;  %1844 = vmatprep.subr.bf16.mxu1 %v2035_v22 }
  0x48   :  { %1088 = vmatprep.subr.bf16.mxu0 %v1998_v9 }
  0x49   :  { %1280 = vmatmul.mubr.bf16.vlgmr.msra.gmra.mrb[8].mxu1 %v2451_v25 }
  0x4a   :  { %1845 = vmatpush3.bf16.msra.mxu1 %v2036_v26  ;;  %1319 = vmatprep.mubr.bf16.mxu1 %v40_v46 }
  0x4b   :  { %1089 = vmatpush1.bf16.msra.mxu0 %v1996_v12  ;;  %1846 = vmatprep.subr.bf16.mxu1 %v2040_v27 }
  0x4c   :  { %1090 = vmatprep.subr.bf16.mxu0 %v2003_v14 }
  0x4e   :  { %1847 = vmatpush3.bf16.msra.mxu1 %v2041_v30 }
  0x4f   :  { %1091 = vmatpush1.bf16.msra.mxu0 %v2001_v19  ;;  %1848 = vmatprep.subr.bf16.mxu1 %v2045_v31 }
  0x50   :  { %1092 = vmatprep.subr.bf16.mxu0 %v2008_v20 }
  0x52   :  { %1849 = vmatpush3.bf16.msra.mxu1 %v2046_v33 }
  0x53   :  { %1093 = vmatpush1.bf16.msra.mxu0 %v2006_v23  ;;  %1850 = vmatprep.subr.bf16.mxu1 %v2050_v35 }
  0x54   :  { %1094 = vmatprep.subr.bf16.mxu0 %v2013_v24 }
  0x56   :  { %1851 = vmatpush3.bf16.msra.mxu1 %v2051_v38 }
  0x57   :  { %1095 = vmatpush1.bf16.msra.mxu0 %v2011_v28  ;;  %1852 = vmatprep.subr.bf16.mxu1 %v2055_v39 }
  0x58   :  { %1096 = vmatprep.subr.bf16.mxu0 %v2018_v29 }
  0x5a   :  { %1853 = vmatpush3.bf16.msra.mxu1 %v2056_v43 }
  0x5b   :  { %1097 = vmatpush1.bf16.msra.mxu0 %v2016_v32  ;;  %1854 = vmatprep.subr.bf16.mxu1 %v2060_v45 }
  0x5c   :  { %1098 = vmatprep.subr.bf16.mxu0 %v2023_v34 }
  0x5e   :  { %1855 = vmatpush3.bf16.msra.mxu1 %v2061_v48 }
  0x5f   :  { %1099 = vmatpush1.bf16.msra.mxu0 %v2021_v36  ;;  %1856 = vmatprep.subr.bf16.mxu1 %v2065_v50 }
  0x60   :  { %1100 = vmatprep.subr.bf16.mxu0 %v2028_v37 }
  0x62   :  { %1857 = vmatpush3.bf16.msra.mxu1 %v2066_v52 }
  0x63   :  { %1101 = vmatpush1.bf16.msra.mxu0 %v2026_v40  ;;  %1858 = vmatprep.subr.bf16.mxu1 %v2070_v54 }
  0x64   :  { %1102 = vmatprep.subr.bf16.mxu0 %v2033_v42 }
  0x66   :  { %1859 = vmatpush3.bf16.msra.mxu1 %v2071_v56 }
  0x67   :  { %1103 = vmatpush1.bf16.msra.mxu0 %v2031_v47  ;;  %1892 = vmatprep.subr.bf16.mxu1 %v2171_v62 }
  0x68   :  { %1104 = vmatprep.subr.bf16.mxu0 %v2039_v49 }
  0x69   :  { %1320 = vmatmul.mubr.bf16.vlgmr.msra.gmra.mrb[12].mxu1 %v2544_v58 }
  0x6a   :  { %1893 = vmatpush3.bf16.msra.mxu1 %v2079_v60  ;;  %1894 = vmatprep.mubr.msk.bf16.mxu1 %vm2172_vm1, %v2171_v62 }
  0x6b   :  { %1105 = vmatpush1.bf16.msra.mxu0 %v2037_v51 }
  0x6c   :  { %1106 = vmatprep.subr.bf16.mxu0 %v2044_v53 }
  0x6f   :  { %1107 = vmatpush1.bf16.msra.mxu0 %v2042_v55 }
  0x70   :  { %1108 = vmatprep.subr.bf16.mxu0 %v2049_v57 }
  0x71   :  { %1895 = vmatmul.mubr.msk.bf16.vlgmr.msra.gmra.mrb[16].mxu1 %vm1039_vm0, %v2249_v16 }
  0x73   :  { %1109 = vmatpush1.bf16.msra.mxu0 %v2047_v59 }
  0x74   :  { %1110 = vmatprep.subr.bf16.mxu0 %v2054_v61 }
  0x77   :  { %1111 = vmatpush1.bf16.msra.mxu0 %v2052_v63 }
  0x78   :  { %1112 = vmatprep.subr.bf16.mxu0 %v2059_v0 }
  0x7b   :  { %1113 = vmatpush1.bf16.msra.mxu0 %v2057_v1 }
  0x7c   :  { %1114 = vmatprep.subr.bf16.mxu0 %v2064_v2 }
  0x7d   :  { %10 = vsyncpa [#allocation3], 0  ;;  %v2067_v5 = vld [vmem:[%s2752_s1 + $0x300] ss:$12 sps:$4 sm:$0xff]   ;;  %v2075_v6 = vld [vmem:[%s2752_s1 + $0x31c] ss:$12 sps:$4 sm:$0xff]   ;;  %v240_v52 = vlaneseq }
  0x7e   :  { %v2073_v16 = vld [vmem:[%s2752_s1 + $0x318] ss:$12 sps:$4 sm:$0xff]   ;;  %v2078_v7 = vld [vmem:[%s2752_s1 + $0x334] ss:$12 sps:$4 sm:$0xff]   ;;  %v2076_v8 = vld [vmem:[%s2752_s1 + $0x330] ss:$12 sps:$4 sm:$0xff]  }
  0x7f   :  { %1115 = vmatpush1.bf16.msra.mxu0 %v2062_v3  ;;  %v2082_v9 = vld [vmem:[%s2752_s1 + $0x34c] ss:$12 sps:$4 sm:$0xff]   ;;  %v2080_v10 = vld [vmem:[%s2752_s1 + $0x348] ss:$12 sps:$4 sm:$0xff]   ;;  %v2085_v11 = vld [vmem:[%s2752_s1 + $0x364] ss:$12 sps:$4 sm:$0xff]  }
  0x80   :  { %1125 = vmatprep.subr.bf16.mxu0 %v2069_v4  ;;  %v2083_v12 = vld [vmem:[%s2752_s1 + $0x360] ss:$12 sps:$4 sm:$0xff]   ;;  %v2088_v13 = vld [vmem:[%s2752_s1 + $0x37c] ss:$12 sps:$4 sm:$0xff]   ;;  %v2086_v14 = vld [vmem:[%s2752_s1 + $0x378] ss:$12 sps:$4 sm:$0xff]  }
  0x81   :  { %v2091_v15 = vld [vmem:[%s2752_s1 + $0x394] ss:$12 sps:$4 sm:$0xff]   ;;  %v2089_v17 = vld [vmem:[%s2752_s1 + $0x390] ss:$12 sps:$4 sm:$0xff]   ;;  %v2094_v18 = vld [vmem:[%s2752_s1 + $0x3ac] ss:$12 sps:$4 sm:$0xff]  }
  0x82   :  { %1117 = vmatmul.mubr.bf16.vlgmr.msra.gmra.mrb[0].mxu0 %v2451_v25  ;;  %v2092_v19 = vld [vmem:[%s2752_s1 + $0x3a8] ss:$12 sps:$4 sm:$0xff]   ;;  %v2097_v20 = vld [vmem:[%s2752_s1 + $0x3c4] ss:$12 sps:$4 sm:$0xff]   ;;  %v2095_v21 = vld [vmem:[%s2752_s1 + $0x3c0] ss:$12 sps:$4 sm:$0xff]  }
  0x83   :  { %1126 = vmatpush1.bf16.msra.mxu0 %v2067_v5  ;;  %1157 = vmatprep.mubr.bf16.mxu0 %v40_v46  ;;  %v2100_v22 = vld [vmem:[%s2752_s1 + $0x3dc] ss:$12 sps:$4 sm:$0xff]   ;;  %v2098_v23 = vld [vmem:[%s2752_s1 + $0x3d8] ss:$12 sps:$4 sm:$0xff]   ;;  %v2103_v24 = vld [vmem:[%s2752_s1 + $0x3f4] ss:$12 sps:$4 sm:$0xff]  }
  0x84   :  { %1127 = vmatprep.subr.bf16.mxu0 %v2075_v6  ;;  %v2101_v25 = vld [vmem:[%s2752_s1 + $0x3f0] ss:$12 sps:$4 sm:$0xff]   ;;  %v2106_v26 = vld [vmem:[%s2752_s1 + $0x40c] ss:$12 sps:$4 sm:$0xff]   ;;  %v2104_v27 = vld [vmem:[%s2752_s1 + $0x408] ss:$12 sps:$4 sm:$0xff]  }
  0x85   :  { %v2109_v28 = vld [vmem:[%s2752_s1 + $0x424] ss:$12 sps:$4 sm:$0xff]   ;;  %v2107_v29 = vld [vmem:[%s2752_s1 + $0x420] ss:$12 sps:$4 sm:$0xff]   ;;  %v2112_v30 = vld [vmem:[%s2752_s1 + $0x43c] ss:$12 sps:$4 sm:$0xff]  }
  0x86   :  { %v2110_v31 = vld [vmem:[%s2752_s1 + $0x438] ss:$12 sps:$4 sm:$0xff]   ;;  %v2115_v32 = vld [vmem:[%s2752_s1 + $0x454] ss:$12 sps:$4 sm:$0xff]   ;;  %v2113_v33 = vld [vmem:[%s2752_s1 + $0x450] ss:$12 sps:$4 sm:$0xff]  }
  0x87   :  { %1128 = vmatpush1.bf16.msra.mxu0 %v2073_v16  ;;  %v2118_v34 = vld [vmem:[%s2752_s1 + $0x46c] ss:$12 sps:$4 sm:$0xff]   ;;  %v2116_v35 = vld [vmem:[%s2752_s1 + $0x468] ss:$12 sps:$4 sm:$0xff]   ;;  %v2119_v36 = vld [vmem:[%s2754_s3 + $0x40] sm:$0xff]   ;;  %v241_v55 = vshrl.u32 %v240_v52, 7 }
  0x88   :  { %1129 = vmatprep.subr.bf16.mxu0 %v2078_v7  ;;  %v2120_v37 = vld [vmem:[%s2754_s3] sm:$0xff]   ;;  %v2121_v38 = vld [vmem:[%s2754_s3 + $0x48] sm:$0xff]   ;;  %1868 = vmatprep.subr.bf16.mxu1 %v2119_v36  ;;  %v2123_v40 = vld [vmem:[%s2754_s3 + $0x50] sm:$0xff]   ;;  %vm1516_vm2 = vcmask 1041408   ;;  %vm1512_vm3 = vcmask 31744   ;;  %vm1604_vm5 = vcmask 1043456  }
  0x89   :  { %1869 = vmatpush3.bf16.msra.mxu1 %v2120_v37  ;;  %v2122_v39 = vld [vmem:[%s2754_s3 + $0x8] sm:$0xff]   ;;  %v2124_v41 = vld [vmem:[%s2754_s3 + $0x10] sm:$0xff]   ;;  %v2125_v51 = vld [vmem:[%s2754_s3 + $0x58] sm:$0xff]  }
  0x8a   :  { %1870 = vmatprep.subr.bf16.mxu1 %v2121_v38  ;;  %v2126_v53 = vld [vmem:[%s2754_s3 + $0x18] sm:$0xff]   ;;  %v2127_v54 = vld [vmem:[%s2754_s3 + $0x60] sm:$0xff]   ;;  %v2129_v57 = vld [vmem:[%s2754_s3 + $0x68] sm:$0xff]  }
  0x8b   :  { %1130 = vmatpush1.bf16.msra.mxu0 %v2076_v8  ;;  %v2128_v56 = vld [vmem:[%s2754_s3 + $0x20] sm:$0xff]   ;;  %v2130_v59 = vld [vmem:[%s2754_s3 + $0x28] sm:$0xff]   ;;  %v2131_v60 = vld [vmem:[%s2754_s3 + $0x70] sm:$0xff]  }
  0x8c   :  { %1131 = vmatprep.subr.bf16.mxu0 %v2082_v9  ;;  %v238_v61 = vld [vmem:[%s2753_s2] sm:$0x7]  ;;  %v2132_v63 = vld [vmem:[%s2754_s3 + $0x30] sm:$0xff]   ;;  %v2133_v0 = vld [vmem:[%s2754_s3 + $0x78] sm:$0xff]  }
  0x8d   :  { %1871 = vmatpush3.bf16.msra.mxu1 %v2122_v39  ;;  %v2134_v2 = vld [vmem:[%s2754_s3 + $0x38] sm:$0xff]   ;;  %v2135_v36 = vld [vmem:[%s2754_s3 + $0x80] ss:$0 sps:$4 sm:$0x33]  }
  0x8e   :  { %1872 = vmatprep.subr.bf16.mxu1 %v2123_v40  ;;  %v1518_v38 = vsel %vm1516_vm2, %v2135_v36, 0 }
  0x8f   :  { %1132 = vmatpush1.bf16.msra.mxu0 %v2080_v10 }
  0x90   :  { %1133 = vmatprep.subr.bf16.mxu0 %v2085_v11 }
  0x91   :  { %1873 = vmatpush3.bf16.msra.mxu1 %v2124_v41 }
  0x92   :  { %1874 = vmatprep.subr.bf16.mxu1 %v2125_v51 }
  0x93   :  { %1134 = vmatpush1.bf16.msra.mxu0 %v2083_v12 }
  0x94   :  { %1135 = vmatprep.subr.bf16.mxu0 %v2088_v13 }
  0x95   :  { %1875 = vmatpush3.bf16.msra.mxu1 %v2126_v53 }
  0x96   :  { %1876 = vmatprep.subr.bf16.mxu1 %v2127_v54 }
  0x97   :  { %1136 = vmatpush1.bf16.msra.mxu0 %v2086_v14 }
  0x98   :  { %1137 = vmatprep.subr.bf16.mxu0 %v2091_v15 }
  0x99   :  { %1877 = vmatpush3.bf16.msra.mxu1 %v2128_v56 }
  0x9a   :  { %1878 = vmatprep.subr.bf16.mxu1 %v2129_v57 }
  0x9b   :  { %1138 = vmatpush1.bf16.msra.mxu0 %v2089_v17 }
  0x9c   :  { %1139 = vmatprep.subr.bf16.mxu0 %v2094_v18 }
  0x9d   :  { %1879 = vmatpush3.bf16.msra.mxu1 %v2130_v59 }
  0x9e   :  { %1880 = vmatprep.subr.bf16.mxu1 %v2131_v60 }
  0x9f   :  { %1140 = vmatpush1.bf16.msra.mxu0 %v2092_v19 }
  0xa0   :  { %1141 = vmatprep.subr.bf16.mxu0 %v2097_v20 }
  0xa1   :  { %1881 = vmatpush3.bf16.msra.mxu1 %v2132_v63 }
  0xa2   :  { %1882 = vmatprep.subr.bf16.mxu1 %v2133_v0 }
  0xa3   :  { %1142 = vmatpush1.bf16.msra.mxu0 %v2095_v21  ;;  %v242_v21 = vsub.s32 0, %v241_v55 }
  0xa4   :  { %1143 = vmatprep.subr.bf16.mxu0 %v2100_v22  ;;  %v246_v22 = vsub.s32 1, %v241_v55 }
  0xa5   :  { %1883 = vmatpush3.bf16.msra.mxu1 %v2134_v2 }
  0xa6   :  { %1898 = vmatprep.subr.bf16.mxu1 %v2171_v62 }
  0xa7   :  { %1144 = vmatpush1.bf16.msra.mxu0 %v2098_v23  ;;  %v243_v23 = vrot.slane %v238_v61, %v242_v21 }
  0xa8   :  { %1145 = vmatprep.subr.bf16.mxu0 %v2103_v24  ;;  %v247_v24 = vrot.slane %v238_v61, %v246_v22 }
  0xab   :  { %1146 = vmatpush1.bf16.msra.mxu0 %v2101_v25 }
  0xac   :  { %1147 = vmatprep.subr.bf16.mxu0 %v2106_v26 }
  0xaf   :  { %1148 = vmatpush1.bf16.msra.mxu0 %v2104_v27 }
  0xb0   :  { %1149 = vmatprep.subr.bf16.mxu0 %v2109_v28 }
  0xb3   :  { %1150 = vmatpush1.bf16.msra.mxu0 %v2107_v29 }
  0xb4   :  { %1151 = vmatprep.subr.bf16.mxu0 %v2112_v30 }
  0xb7   :  { %1152 = vmatpush1.bf16.msra.mxu0 %v2110_v31 }
  0xb8   :  { %1153 = vmatprep.subr.bf16.mxu0 %v2115_v32 }
  0xbb   :  { %1154 = vmatpush1.bf16.msra.mxu0 %v2113_v33 }
  0xbc   :  { %1155 = vmatprep.subr.bf16.mxu0 %v2118_v34 }
  0xbf   :  { %1156 = vmatpush1.bf16.msra.mxu0 %v2116_v35 }
  0xc2   :  { %1158 = vmatmul.mubr.bf16.vlgmr.msra.gmra.mrb[0].mxu0 %v2544_v58  ;;  %v250_v58 = vsub.s32 2, %v241_v55 }
  0xc4   :  { %v251_v1 = vrot.slane %v238_v61, %v250_v58 }
  0xdc   :  { %v1200_v42 = vpop.f32.mrb[0].mxu1 }
  0xdd   :  { %v2692_v43 = vpop.f32.mrb[1].mxu1 }
  0xde   :  { %v1204_v44 = vpop.f32.mrb[2].mxu1 }
  0xdf   :  { %v1205_v45 = vpop.f32.mrb[3].mxu1 }
  0xfc   :  { %v1816_v46 = vpop.f32.mrb[4].mxu1 }
  0xfd   :  { %v1817_v47 = vpop.f32.mrb[5].mxu1 }
  0xfe   :  { %v1818_v48 = vadd.f32 %v1817_v47, %v1816_v46  ;;  %v1819_v49 = vpop.f32.mrb[6].mxu1  ;;  %v1781_v46 = vld [vmem:[%s2755_s4] ss:$0 sm:$0xff]  ;;  %v1601_v47 = vand.u32 127, %v240_v52  ;;  %s2173_s4 = smov [#allocation2]  }
  0xff   :  { %v1820_v50 = vpop.f32.mrb[7].mxu1  ;;  %s1624_s23 = sshll.u32 %s2173_s4, 4  ;;  %s1625_s23 = int_to_ptr.vmem [resolvable:$true] %s1624_s23 }
 0x100   :  { %v1242_v3 = vadd.f32 %v1818_v48, %v251_v1  ;;  %vm1602_vm4 = vcmp.lt.s32.totalorder %v1601_v47, 10  ;;  %s2146_s24 = scalar_lea.vmem %s1625_s23, 64  ;;  %p2151_p1 = scmp.lt.s32.totalorder %s1625_s23, %s1625_s23 }
 0x101   :  { %p2147_p0 = scmp.ne.s32.totalorder %s1625_s23, %s2146_s24  ;;  %p2152_p2 = scmp.lt.s32.totalorder %s2146_s24, %s2146_s24 }
 0x103   :  { %p2153_p3 = por %p2152_p2, %p2151_p1 }
 0x105   :  { %p2154_p4 = pnand %p2153_p3, %p2147_p0 }
 0x11c   :  { %v1838_v4 = vpop.f32.mrb[8].mxu1 }
 0x11d   :  { %v1839_v5 = vpop.f32.mrb[9].mxu1 }
 0x11e   :  { %v1840_v6 = vadd.f32 %v1839_v5, %v1838_v4  ;;  %v1841_v16 = vpop.f32.mrb[10].mxu1 }
 0x11f   :  { %v1842_v7 = vpop.f32.mrb[11].mxu1 }
 0x120   :  { %v1282_v8 = vadd.f32 %v1840_v6, %v1242_v3 }
 0x13c   :  { %v1860_v9 = vpop.f32.mrb[12].mxu1 }
 0x13d   :  { %v1861_v10 = vpop.f32.mrb[13].mxu1 }
 0x13e   :  { %v1862_v11 = vadd.f32 %v1861_v10, %v1860_v9  ;;  %v1863_v12 = vpop.f32.mrb[14].mxu1 }
 0x13f   :  { %v1864_v13 = vpop.f32.mrb[15].mxu1 }
 0x140   :  { %v1322_v14 = vadd.f32 %v1862_v11, %v1282_v8 }
 0x144   :  { %v1361_v15 = vpop.f32.mrb[16].mxu1 }
 0x145   :  { %v1362_v17 = vadd.f32 %v1361_v15, %v1322_v14  ;;  %v1896_v18 = vpop.f32.mrb[17].mxu1 }
 0x146   :  { %v1364_v19 = vpop.f32.mrb[18].mxu1 }
 0x147   :  { %v1897_v20 = vpop.f32.mrb[19].mxu1  ;;  %v1369_v35 = vpack.c.bf16 %v1362_v17, %v1362_v17 }
 0x195   :  { %v1159_v25 = vpop.f32.mrb[0].mxu0 }
 0x196   :  { %v1904_v26 = vadd.f32 %v1159_v25, %v243_v23  ;;  %v1161_v27 = vpop.f32.mrb[1].mxu0 }
 0x197   :  { %v1906_v28 = vadd.f32 %v1161_v27, %v247_v24  ;;  %v1163_v29 = vpop.f32.mrb[2].mxu0 }
 0x198   :  { %v1905_v30 = vadd.f32 %v1904_v26, %v1200_v42  ;;  %v1164_v31 = vpop.f32.mrb[3].mxu0 }
 0x199   :  { %v1907_v32 = vadd.f32 %v1906_v28, %v2692_v43 }
 0x19a   :  { %v1367_v33 = vpack.c.bf16 %v1905_v30, %v1905_v30 }
 0x19b   :  { %v1368_v34 = vpack.c.bf16 %v1907_v32, %v1907_v32 }
 0x19d   :  { %2136 = vtanh.bf16 %v1368_v34 }
 0x19e   :  { %2138 = vtanh.bf16 %v1367_v33 }
 0x19f   :  { %2140 = vtanh.bf16 %v1369_v35 }
 0x1a8   :  { %v2137_v37 = vpop.eup %2136 }
 0x1a9   :  { %v2139_v39 = vpop.eup %2138  ;;  %1552 = vmatprep.mubr.bf16.mxu1 %v2137_v37 }
 0x1aa   :  { %1553 = vmatmul.mubr.bf16.vlgmr.msra.gmra.mrb[20].mxu1 %v2139_v39  ;;  %v2141_v40 = vpop.eup %2140 }
 0x1ab   :  { %1899 = vmatpush3.bf16.msra.mxu1 %v1518_v38  ;;  %1900 = vmatprep.mubr.msk.bf16.mxu1 %vm2172_vm1, %v2171_v62 }
 0x1b2   :  { %1901 = vmatmul.mubr.msk.bf16.vlgmr.msra.gmra.mrb[24].mxu1 %vm1512_vm3, %v2141_v40 }
 0x27d   :  { %v1884_v41 = vpop.f32.mrb[20].mxu1 }
 0x27e   :  { %v1885_v42 = vpop.f32.mrb[21].mxu1 }
 0x27f   :  { %v1886_v43 = vadd.f32 %v1885_v42, %v1884_v41  ;;  %v1887_v44 = vpop.f32.mrb[22].mxu1 }
 0x280   :  { %v1888_v45 = vpop.f32.mrb[23].mxu1 }
 0x281   :  { %v1555_v48 = vadd.f32 %v1886_v43, %v1781_v46 }
 0x285   :  { %v1594_v49 = vpop.f32.mrb[24].mxu1 }
 0x286   :  { %v1595_v50 = vadd.f32 %v1594_v49, %v1555_v48  ;;  %v1902_v51 = vpop.f32.mrb[25].mxu1 }
 0x287   :  { %v1597_v62 = vpop.f32.mrb[26].mxu1 }
 0x288   :  { %v1903_v53 = vpop.f32.mrb[27].mxu1  ;;  %v1603_v54 = vsel %vm1602_vm4, %v1595_v50, -1e+30 }
 0x289   :  { %v1605_v55 = vsel %vm1604_vm5, %v1603_v54, -inf }
 0x28a   :  { %1606 = vmax.xlane.f32.xlu0 %v1605_v55 }
 0x317   :  { %v1607_v56 = vpop.xlane.xlu0 %1606 }
 0x318   :  { %v1608_v57 = vsub.f32 %v1603_v54, %v1607_v56 }
 0x31a   :  { %v1609_v58 = vmul.f32 1.442695, %v1608_v57 }
 0x31c   :  { %2142 = vpow2.f32 %v1609_v58 }
 0x326   :  { %v2143_v59 = vpop.eup %2142 }
 0x327   :  { %v1611_v60 = vsel %vm1604_vm5, %v2143_v59, 0.0 }
 0x328   :  { %1612 = vadd.xlane.f32.xlu0 %v1611_v60 }
 0x3b5   :  { %v1613_v61 = vpop.xlane.xlu0 %1612 }
 0x3b6   :  { %2144 = vlog2.f32 %v1613_v61 }
 0x3c0   :  { %v2145_v52 = vpop.eup %2144 }
 0x3c1   :  { %v1615_v63 = vmul.f32 0.6931472, %v2145_v52 }
 0x3c3   :  { %v1616_v0 = vsub.f32 %v1608_v57, %v1615_v63 }
 0x3c5   :  { %1617 = vst [vmem:[#allocation2] sm:$0xf] %v1616_v0 }
 0x3c6   :  { %2157 = shalt.err (!%p2154_p4)
}
 0x3c7   :  { %s2158_s27 = scalar_lea.hbm %s2756_s5, 64 }
 0x3c8   :  { %p2159_p5 = scmp.ne.s32.totalorder %s2756_s5, %s2158_s27  ;;  %p2162_p6 = scmp.lt.u32.totalorder %s2158_s27, %s2756_s5 }
 0x3ca   :  { %p2164_p7 = pnand %p2162_p6, %p2159_p5 }
 0x3cc   :  { %2167 = shalt.err (!%p2164_p7)
}
 0x3cd   :  { %1627 = dma.vmem_to_hbm [thread:$0]  %s1625_s23, 64, %s2756_s5, [#allocation3]  }
 0x3ce   :  { %2168 = dma.done.wait [#allocation3], 64  }
 0x3cf   :  { %2169 = vsyncadd [#allocation3], 4294967232 }
 0x3d0   :  { %1631 = vsyncpa [#allocation3], 1 }

</bundles_post_ra>
